<compile_context>
chip_gen: v5e
topology: v5e:2x2
jax: 0.10.0
libtpu: 0.0.40
codegen_flags: <defaults>
</compile_context>

<pallas_src>
import functools

import jax
import jax.numpy as jnp
from jax.experimental import pallas as pl
from jax.experimental.pallas import tpu as pltpu


# ----------------------------- kernel 1: attention ---------------------------


def _attn_kernel(x_ref, w_ref, b_ref, o_ref, *, head_num, batch_tile, seq_len):
    H, Bt, S = head_num, batch_tile, seq_len
    x2d = x_ref[...]                                   # (Bt*S, Din)
    D = x2d.shape[-1]                                  # per-head dim == input_dim

    # (1) Q/K/V projection: one lane-dense MXU matmul, N = 3*H*D.
    qkv = jnp.dot(x2d, w_ref[...], preferred_element_type=jnp.float32) + b_ref[...]
    qkv = qkv.reshape(Bt, S, 3 * H * D)                # leading-dim split only

    # (2) head-major (3H, Bt, S, D) via lane slices + leading-axis stack
    #     (no cross-tile transposes).
    heads = jnp.stack([qkv[:, :, g * D:(g + 1) * D] for g in range(3 * H)], axis=0)
    q = heads[:H].reshape(H * Bt, S, D)
    k = heads[H:2 * H].reshape(H * Bt, S, D)
    v = heads[2 * H:].reshape(H * Bt, S, D)

    # (3) scaled scores, batched over all Bt*H (q, k) pairs.
    scale = 1.0 / (float(D) ** 0.5)
    scores = jnp.einsum('nqd,nkd->nqk', q, k,
                        preferred_element_type=jnp.float32) * scale   # (H*Bt, S, S)

    # (4) softmax over the HEAD axis (PyTorch nn.Softmax(dim=1)).
    s4 = scores.reshape(H, Bt, S, S)
    m = jnp.max(s4, axis=0, keepdims=True)
    e = jnp.exp(s4 - m)
    den = jnp.sum(e, axis=0, keepdims=True)
    inv = pl.reciprocal(den, approx=True)
    inv = inv * (2.0 - den * inv)                      # one Newton step -> ~f32 exact
    attn = (e * inv).reshape(H * Bt, S, S)

    # (5) attention output, batched over Bt*H.
    out = jnp.einsum('nqk,nkd->nqd', attn, v,
                     preferred_element_type=jnp.float32)              # (H*Bt, S, D)
    out = out.reshape(H, Bt, S, D)

    # (6) combine_heads: lane-concat -> (Bt, S, H*D); last dim 128 => unmasked,
    #     lane-dense store.
    o_ref[...] = jnp.concatenate([out[h] for h in range(H)], axis=-1).astype(o_ref.dtype)


# ----------------------------- kernel 2: fc ----------------------------------


def _fc_kernel(c_ref, w_ref, b_ref, o_ref):
    # c_ref: (1, Bt, S*H*D), w_ref: (S*H*D, P) VMEM-resident, b_ref: (1, P)
    y = jnp.dot(c_ref[0], w_ref[...], preferred_element_type=jnp.float32) + b_ref[...]
    o_ref[0] = y.astype(o_ref.dtype)


# ----------------------------- wrapper ---------------------------------------


def _pick_batch_tile(B, S, target_rows=256):
    """Largest divisor-of-B tile with Bt*S <= target_rows, keeping >=2 grid
    steps when B >= 2 so both v7x TensorCores get work."""
    bt = max(1, min(B, target_rows // max(S, 1)))
    while B % bt:
        bt -= 1
    if B >= 2 and B // bt < 2:
        for cand in range(bt - 1, 0, -1):
            if B % cand == 0 and B // cand >= 2:
                bt = cand
                break
    return bt


def transformer_mha_forward(x, params, head_num):
    wq_t, bq, wk_t, bk, wv_t, bv, wfc_t, bfc = params
    B, S, Din = x.shape
    H = head_num
    D = Din                                     # per-head dim == input_dim
    HD = H * D
    P = wfc_t.shape[1]

    Bt = _pick_batch_tile(B, S)
    nb = B // Bt

    # Host-side weight packing (fused into the surrounding jit, tiny).
    w_all = jnp.concatenate([wq_t, wk_t, wv_t], axis=1)          # (Din, 3*H*D)
    b_all = jnp.concatenate([bq, bk, bv]).reshape(1, 3 * HD)     # (1, 3*H*D)

    x2d = x.reshape(B * S, Din)                                  # free row-major reshape

    cparams = pltpu.CompilerParams(dimension_semantics=("parallel",),
                                   vmem_limit_bytes=32 * 1024 * 1024)

    # ---- kernel 1: projection + head-softmax attention + combine_heads ----
    attn_out = pl.pallas_call(
        functools.partial(_attn_kernel, head_num=H, batch_tile=Bt, seq_len=S),
        out_shape=jax.ShapeDtypeStruct((B, S, HD), jnp.float32),
        grid=(nb,),
        in_specs=[
            pl.BlockSpec((Bt * S, Din), lambda b: (b, 0)),       # x rows for this tile
            pl.BlockSpec((Din, 3 * HD), lambda b: (0, 0)),       # qkv weights: resident
            pl.BlockSpec((1, 3 * HD), lambda b: (0, 0)),         # qkv biases: resident
        ],
        out_specs=pl.BlockSpec((Bt, S, HD), lambda b: (b, 0, 0)),
        compiler_params=cparams,
    )(x2d, w_all, b_all)

    # combine_heads flatten: (B, S, H*D) -> (B, S*H*D) is free and matches the
    # PyTorch s*H*D + h*D + d order, so wfc_t needs no permutation.
    combined = attn_out.reshape(nb, Bt, S * HD)

    # ---- kernel 2: fc as one MXU matmul per batch tile ----
    out = pl.pallas_call(
        _fc_kernel,
        out_shape=jax.ShapeDtypeStruct((nb, Bt, P), jnp.float32),
        grid=(nb,),
        in_specs=[
            pl.BlockSpec((1, Bt, S * HD), lambda b: (b, 0, 0)),
            pl.BlockSpec((S * HD, P), lambda b: (0, 0)),         # fc weight: resident
            pl.BlockSpec((1, P), lambda b: (0, 0)),              # fc bias: resident
        ],
        out_specs=pl.BlockSpec((1, Bt, P), lambda b: (b, 0, 0)),
        compiler_params=cparams,
    )(combined, wfc_t, bfc.reshape(1, P))
    return out.reshape(B, P)


# ----------------------------- reference ------------------------------------


def reference_forward(x, params, head_num):
    wq_t, bq, wk_t, bk, wv_t, bv, wfc_t, bfc = params
    B, S, Din = x.shape
    q = x @ wq_t + bq
    k = x @ wk_t + bk
    v = x @ wv_t + bv

    def split(t):
        return t.reshape(B, S, head_num, Din).transpose(0, 2, 1, 3)

    q, k, v = split(q), split(k), split(v)
    scores = jnp.einsum('bhsd,bhtd->bhst', q, k) / jnp.sqrt(jnp.float32(Din))
    attn = jax.nn.softmax(scores, axis=1)               # PyTorch Softmax(dim=1)
    out = jnp.einsum('bhst,bhtd->bhsd', attn, v)
    combined = out.transpose(0, 2, 1, 3).reshape(B, -1)
    return combined @ wfc_t + bfc


# ----------------------------- main ------------------------------------------


if __name__ == "__main__":
    B = 2
    input_dim = 32
    output_dim = 8          # sequence length implied by the fc in_features
    head_num = 4
    predict_dim = 1
    S = output_dim
    HD = input_dim * head_num

    key = jax.random.PRNGKey(0)
    keys = jax.random.split(key, 9)

    def linear_init(kw, kb, fan_in, fan_out):
        # PyTorch nn.Linear init: U(-1/sqrt(fan_in), 1/sqrt(fan_in)); stored
        # already transposed as (fan_in, fan_out).
        bound = 1.0 / (float(fan_in) ** 0.5)
        w_t = jax.random.uniform(kw, (fan_in, fan_out), jnp.float32, -bound, bound)
        b = jax.random.uniform(kb, (fan_out,), jnp.float32, -bound, bound)
        return w_t, b

    wq_t, bq = linear_init(keys[0], keys[1], input_dim, HD)
    wk_t, bk = linear_init(keys[2], keys[3], input_dim, HD)
    wv_t, bv = linear_init(keys[4], keys[5], input_dim, HD)
    wfc_t, bfc = linear_init(keys[6], keys[7], HD * output_dim, predict_dim)
    params = (wq_t, bq, wk_t, bk, wv_t, bv, wfc_t, bfc)

    x = jax.random.normal(keys[8], (B, S, input_dim), jnp.float32)

    fwd = jax.jit(transformer_mha_forward, static_argnums=(2,))
    out = jax.block_until_ready(fwd(x, params, head_num))

    ref = reference_forward(x, params, head_num)
    assert out.shape == (B, predict_dim), out.shape
    assert jnp.allclose(out, ref, rtol=1e-3, atol=1e-3), (out, ref)

    print("KERNEL_OK")
</pallas_src>

<mosaic_0001>
module attributes {stable_mosaic.version = 11 : i64} {
  func.func @_attn_kernel(%arg0: i32, %arg1: memref<8x32xf32, #tpu.memory_space<vmem>>, %arg2: memref<32x384xf32, #tpu.memory_space<vmem>>, %arg3: memref<1x384xf32, #tpu.memory_space<vmem>>, %arg4: memref<1x8x128xf32, #tpu.memory_space<vmem>>) attributes {dimension_semantics = [#tpu.dimension_semantics<parallel>], iteration_bounds = array<i64: 2>, scalar_prefetch = 0 : i64, scratch_operands = 0 : i64, tpu.core_type = #tpu.core_type<tc>, window_params = [{transform_indices = @transform_0, window_bounds = array<i64: 8, 32>}, {pipeline_mode = #tpu.pipeline_mode<synchronous>, transform_indices = @transform_1, window_bounds = array<i64: 32, 384>}, {pipeline_mode = #tpu.pipeline_mode<synchronous>, transform_indices = @transform_2, window_bounds = array<i64: 1, 384>}, {transform_indices = @transform_3, window_bounds = array<i64: 1, 8, 128>}]} {
    %c0 = arith.constant 0 : index
    %c0_0 = arith.constant 0 : index
    %0 = vector.load %arg1[%c0, %c0_0] : memref<8x32xf32, #tpu.memory_space<vmem>>, vector<8x32xf32>
    %c0_1 = arith.constant 0 : index
    %c0_2 = arith.constant 0 : index
    %1 = vector.load %arg2[%c0_1, %c0_2] : memref<32x384xf32, #tpu.memory_space<vmem>>, vector<32x384xf32>
    %cst = arith.constant dense<0.000000e+00> : vector<8x384xf32>
    %2 = tpu.matmul %0, %1, %cst {dimension_numbers = #tpu.dot_dimension_numbers<[1], [0], [0], [1], [0, 0, 1, 1], [], []>} : vector<8x32xf32>, vector<32x384xf32>, vector<8x384xf32> -> vector<8x384xf32>
    %c0_3 = arith.constant 0 : index
    %c0_4 = arith.constant 0 : index
    %3 = vector.load %arg3[%c0_3, %c0_4] : memref<1x384xf32, #tpu.memory_space<vmem>>, vector<1x384xf32>
    %4 = vector.broadcast %3 : vector<1x384xf32> to vector<8x384xf32>
    %5 = arith.addf %2, %4 : vector<8x384xf32>
    %6 = vector.shape_cast %5 : vector<8x384xf32> to vector<1x8x384xf32>
    %7 = vector.extract_strided_slice %6 {offsets = [0, 0, 0], sizes = [1, 8, 32], strides = [1, 1, 1]} : vector<1x8x384xf32> to vector<1x8x32xf32>
    %8 = vector.extract_strided_slice %6 {offsets = [0, 0, 32], sizes = [1, 8, 32], strides = [1, 1, 1]} : vector<1x8x384xf32> to vector<1x8x32xf32>
    %9 = vector.extract_strided_slice %6 {offsets = [0, 0, 64], sizes = [1, 8, 32], strides = [1, 1, 1]} : vector<1x8x384xf32> to vector<1x8x32xf32>
    %10 = vector.extract_strided_slice %6 {offsets = [0, 0, 96], sizes = [1, 8, 32], strides = [1, 1, 1]} : vector<1x8x384xf32> to vector<1x8x32xf32>
    %11 = vector.extract_strided_slice %6 {offsets = [0, 0, 128], sizes = [1, 8, 32], strides = [1, 1, 1]} : vector<1x8x384xf32> to vector<1x8x32xf32>
    %12 = vector.extract_strided_slice %6 {offsets = [0, 0, 160], sizes = [1, 8, 32], strides = [1, 1, 1]} : vector<1x8x384xf32> to vector<1x8x32xf32>
    %13 = vector.extract_strided_slice %6 {offsets = [0, 0, 192], sizes = [1, 8, 32], strides = [1, 1, 1]} : vector<1x8x384xf32> to vector<1x8x32xf32>
    %14 = vector.extract_strided_slice %6 {offsets = [0, 0, 224], sizes = [1, 8, 32], strides = [1, 1, 1]} : vector<1x8x384xf32> to vector<1x8x32xf32>
    %15 = vector.extract_strided_slice %6 {offsets = [0, 0, 256], sizes = [1, 8, 32], strides = [1, 1, 1]} : vector<1x8x384xf32> to vector<1x8x32xf32>
    %16 = vector.extract_strided_slice %6 {offsets = [0, 0, 288], sizes = [1, 8, 32], strides = [1, 1, 1]} : vector<1x8x384xf32> to vector<1x8x32xf32>
    %17 = vector.extract_strided_slice %6 {offsets = [0, 0, 320], sizes = [1, 8, 32], strides = [1, 1, 1]} : vector<1x8x384xf32> to vector<1x8x32xf32>
    %18 = vector.extract_strided_slice %6 {offsets = [0, 0, 352], sizes = [1, 8, 32], strides = [1, 1, 1]} : vector<1x8x384xf32> to vector<1x8x32xf32>
    %19 = vector.shape_cast %7 : vector<1x8x32xf32> to vector<1x1x8x32xf32>
    %20 = vector.shape_cast %8 : vector<1x8x32xf32> to vector<1x1x8x32xf32>
    %21 = vector.shape_cast %9 : vector<1x8x32xf32> to vector<1x1x8x32xf32>
    %22 = vector.shape_cast %10 : vector<1x8x32xf32> to vector<1x1x8x32xf32>
    %23 = vector.shape_cast %11 : vector<1x8x32xf32> to vector<1x1x8x32xf32>
    %24 = vector.shape_cast %12 : vector<1x8x32xf32> to vector<1x1x8x32xf32>
    %25 = vector.shape_cast %13 : vector<1x8x32xf32> to vector<1x1x8x32xf32>
    %26 = vector.shape_cast %14 : vector<1x8x32xf32> to vector<1x1x8x32xf32>
    %27 = vector.shape_cast %15 : vector<1x8x32xf32> to vector<1x1x8x32xf32>
    %28 = vector.shape_cast %16 : vector<1x8x32xf32> to vector<1x1x8x32xf32>
    %29 = vector.shape_cast %17 : vector<1x8x32xf32> to vector<1x1x8x32xf32>
    %30 = vector.shape_cast %18 : vector<1x8x32xf32> to vector<1x1x8x32xf32>
    %31 = tpu.concatenate %19, %20, %21, %22, %23, %24, %25, %26, %27, %28, %29, %30 in 0 : vector<1x1x8x32xf32>, vector<1x1x8x32xf32>, vector<1x1x8x32xf32>, vector<1x1x8x32xf32>, vector<1x1x8x32xf32>, vector<1x1x8x32xf32>, vector<1x1x8x32xf32>, vector<1x1x8x32xf32>, vector<1x1x8x32xf32>, vector<1x1x8x32xf32>, vector<1x1x8x32xf32>, vector<1x1x8x32xf32> -> vector<12x1x8x32xf32>
    %32 = vector.extract_strided_slice %31 {offsets = [0, 0, 0, 0], sizes = [4, 1, 8, 32], strides = [1, 1, 1, 1]} : vector<12x1x8x32xf32> to vector<4x1x8x32xf32>
    %33 = vector.shape_cast %32 : vector<4x1x8x32xf32> to vector<4x8x32xf32>
    %34 = vector.extract_strided_slice %31 {offsets = [4, 0, 0, 0], sizes = [4, 1, 8, 32], strides = [1, 1, 1, 1]} : vector<12x1x8x32xf32> to vector<4x1x8x32xf32>
    %35 = vector.shape_cast %34 : vector<4x1x8x32xf32> to vector<4x8x32xf32>
    %36 = vector.extract_strided_slice %31 {offsets = [8, 0, 0, 0], sizes = [4, 1, 8, 32], strides = [1, 1, 1, 1]} : vector<12x1x8x32xf32> to vector<4x1x8x32xf32>
    %37 = vector.shape_cast %36 : vector<4x1x8x32xf32> to vector<4x8x32xf32>
    "tpu.trace_start"() <{level = 10 : i32, message = "nqd,nkd->nqk"}> : () -> ()
    %cst_5 = arith.constant dense<0.000000e+00> : vector<4x8x8xf32>
    %38 = tpu.matmul %33, %35, %cst_5 {dimension_numbers = #tpu.dot_dimension_numbers<[2], [2], [1], [1], [0, 0, 0, 1, 1, 1], [0], [0]>} : vector<4x8x32xf32>, vector<4x8x32xf32>, vector<4x8x8xf32> -> vector<4x8x8xf32>
    "tpu.trace_stop"() : () -> ()
    %cst_6 = arith.constant 0.176776692 : f32
    %39 = vector.broadcast %cst_6 : f32 to vector<4x8x8xf32>
    %40 = arith.mulf %38, %39 : vector<4x8x8xf32>
    %41 = vector.shape_cast %40 : vector<4x8x8xf32> to vector<4x1x8x8xf32>
    %cst_7 = arith.constant dense<0xFF800000> : vector<1x8x8xf32>
    %42 = vector.multi_reduction <maximumf>, %41, %cst_7 [0] : vector<4x1x8x8xf32> to vector<1x8x8xf32>
    %43 = vector.shape_cast %42 : vector<1x8x8xf32> to vector<1x1x8x8xf32>
    %44 = vector.broadcast %43 : vector<1x1x8x8xf32> to vector<4x1x8x8xf32>
    %45 = arith.subf %41, %44 : vector<4x1x8x8xf32>
    %46 = math.exp %45 : vector<4x1x8x8xf32>
    %cst_8 = arith.constant dense<0.000000e+00> : vector<1x8x8xf32>
    %47 = vector.multi_reduction <add>, %46, %cst_8 [0] : vector<4x1x8x8xf32> to vector<1x8x8xf32>
    %48 = vector.shape_cast %47 : vector<1x8x8xf32> to vector<1x1x8x8xf32>
    %49 = tpu.reciprocal %48 {approx = true} : vector<1x1x8x8xf32> -> vector<1x1x8x8xf32>
    %50 = arith.mulf %48, %49 : vector<1x1x8x8xf32>
    %cst_9 = arith.constant 2.000000e+00 : f32
    %51 = vector.broadcast %cst_9 : f32 to vector<1x1x8x8xf32>
    %52 = arith.subf %51, %50 : vector<1x1x8x8xf32>
    %53 = arith.mulf %49, %52 : vector<1x1x8x8xf32>
    %54 = vector.broadcast %53 : vector<1x1x8x8xf32> to vector<4x1x8x8xf32>
    %55 = arith.mulf %46, %54 : vector<4x1x8x8xf32>
    %56 = vector.shape_cast %55 : vector<4x1x8x8xf32> to vector<4x8x8xf32>
    "tpu.trace_start"() <{level = 10 : i32, message = "nqk,nkd->nqd"}> : () -> ()
    %cst_10 = arith.constant dense<0.000000e+00> : vector<4x8x32xf32>
    %57 = tpu.matmul %56, %37, %cst_10 {dimension_numbers = #tpu.dot_dimension_numbers<[2], [1], [1], [2], [0, 0, 0, 1, 1, 2], [0], [0]>} : vector<4x8x8xf32>, vector<4x8x32xf32>, vector<4x8x32xf32> -> vector<4x8x32xf32>
    "tpu.trace_stop"() : () -> ()
    %58 = vector.shape_cast %57 : vector<4x8x32xf32> to vector<4x1x8x32xf32>
    %59 = vector.extract_strided_slice %58 {offsets = [0, 0, 0, 0], sizes = [1, 1, 8, 32], strides = [1, 1, 1, 1]} : vector<4x1x8x32xf32> to vector<1x1x8x32xf32>
    %60 = vector.shape_cast %59 : vector<1x1x8x32xf32> to vector<1x8x32xf32>
    %61 = vector.extract_strided_slice %58 {offsets = [1, 0, 0, 0], sizes = [1, 1, 8, 32], strides = [1, 1, 1, 1]} : vector<4x1x8x32xf32> to vector<1x1x8x32xf32>
    %62 = vector.shape_cast %61 : vector<1x1x8x32xf32> to vector<1x8x32xf32>
    %63 = vector.extract_strided_slice %58 {offsets = [2, 0, 0, 0], sizes = [1, 1, 8, 32], strides = [1, 1, 1, 1]} : vector<4x1x8x32xf32> to vector<1x1x8x32xf32>
    %64 = vector.shape_cast %63 : vector<1x1x8x32xf32> to vector<1x8x32xf32>
    %65 = vector.extract_strided_slice %58 {offsets = [3, 0, 0, 0], sizes = [1, 1, 8, 32], strides = [1, 1, 1, 1]} : vector<4x1x8x32xf32> to vector<1x1x8x32xf32>
    %66 = vector.shape_cast %65 : vector<1x1x8x32xf32> to vector<1x8x32xf32>
    %67 = tpu.concatenate %60, %62, %64, %66 in 2 : vector<1x8x32xf32>, vector<1x8x32xf32>, vector<1x8x32xf32>, vector<1x8x32xf32> -> vector<1x8x128xf32>
    %c0_11 = arith.constant 0 : index
    %c0_12 = arith.constant 0 : index
    %c0_13 = arith.constant 0 : index
    %68 = vector.load %arg4[%c0_11, %c0_12, %c0_13] : memref<1x8x128xf32, #tpu.memory_space<vmem>>, vector<1x8x128xf32>
    tpu.vector_store %arg4[%c0_11, %c0_12, %c0_13], %67 {strides = array<i32>} : memref<1x8x128xf32, #tpu.memory_space<vmem>>, vector<1x8x128xf32>,
    return
  }
  func.func @transform_0(%arg0: i32) -> (i32, i32) {
    %c0_i32 = arith.constant 0 : i32
    %c0_i32_0 = arith.constant 0 : i32
    return %arg0, %c0_i32 : i32, i32
  }
  func.func @transform_1(%arg0: i32) -> (i32, i32) {
    %c0_i32 = arith.constant 0 : i32
    %c0_i32_0 = arith.constant 0 : i32
    %c0_i32_1 = arith.constant 0 : i32
    return %c0_i32, %c0_i32_0 : i32, i32
  }
  func.func @transform_2(%arg0: i32) -> (i32, i32) {
    %c0_i32 = arith.constant 0 : i32
    %c0_i32_0 = arith.constant 0 : i32
    %c0_i32_1 = arith.constant 0 : i32
    return %c0_i32, %c0_i32_0 : i32, i32
  }
  func.func @transform_3(%arg0: i32) -> (i32, i32, i32) {
    %c0_i32 = arith.constant 0 : i32
    %c0_i32_0 = arith.constant 0 : i32
    %c0_i32_1 = arith.constant 0 : i32
    return %arg0, %c0_i32, %c0_i32_0 : i32, i32, i32
  }
}

module attributes {stable_mosaic.version = 11 : i64} {
  func.func @_fc_kernel(%arg0: i32, %arg1: memref<1x1x1024xf32, #tpu.memory_space<vmem>>, %arg2: memref<1024x1xf32, #tpu.memory_space<vmem>>, %arg3: memref<1x1xf32, #tpu.memory_space<vmem>>, %arg4: memref<1x1x1xf32, #tpu.memory_space<vmem>>) attributes {dimension_semantics = [#tpu.dimension_semantics<parallel>], iteration_bounds = array<i64: 2>, scalar_prefetch = 0 : i64, scratch_operands = 0 : i64, tpu.core_type = #tpu.core_type<tc>, window_params = [{transform_indices = @transform_0, window_bounds = array<i64: 1, 1, 1024>}, {pipeline_mode = #tpu.pipeline_mode<synchronous>, transform_indices = @transform_1, window_bounds = array<i64: 1024, 1>}, {pipeline_mode = #tpu.pipeline_mode<synchronous>, transform_indices = @transform_2, window_bounds = array<i64: 1, 1>}, {transform_indices = @transform_3, window_bounds = array<i64: 1, 1, 1>}]} {
    %c0 = arith.constant 0 : index
    %c0_0 = arith.constant 0 : index
    %c0_1 = arith.constant 0 : index
    %0 = vector.load %arg1[%c0, %c0_0, %c0_1] : memref<1x1x1024xf32, #tpu.memory_space<vmem>>, vector<1x1x1024xf32>
    %1 = vector.shape_cast %0 : vector<1x1x1024xf32> to vector<1x1024xf32>
    %c0_2 = arith.constant 0 : index
    %c0_3 = arith.constant 0 : index
    %2 = vector.load %arg2[%c0_2, %c0_3] : memref<1024x1xf32, #tpu.memory_space<vmem>>, vector<1024x1xf32>
    %cst = arith.constant dense<0.000000e+00> : vector<1x1xf32>
    %3 = tpu.matmul %1, %2, %cst {dimension_numbers = #tpu.dot_dimension_numbers<[1], [0], [0], [1], [0, 0, 1, 1], [], []>} : vector<1x1024xf32>, vector<1024x1xf32>, vector<1x1xf32> -> vector<1x1xf32>
    %c0_4 = arith.constant 0 : index
    %c0_5 = arith.constant 0 : index
    %4 = vector.load %arg3[%c0_4, %c0_5] : memref<1x1xf32, #tpu.memory_space<vmem>>, vector<1x1xf32>
    %5 = arith.addf %3, %4 : vector<1x1xf32>
    %c0_6 = arith.constant 0 : index
    %c0_7 = arith.constant 0 : index
    %c0_8 = arith.constant 0 : index
    %6 = vector.load %arg4[%c0_6, %c0_7, %c0_8] : memref<1x1x1xf32, #tpu.memory_space<vmem>>, vector<1x1x1xf32>
    %7 = vector.shape_cast %6 : vector<1x1x1xf32> to vector<1x1xf32>
    %8 = vector.shape_cast %5 : vector<1x1xf32> to vector<1x1x1xf32>
    tpu.vector_store %arg4[%c0_6, %c0_7, %c0_8], %8 {strides = array<i32>} : memref<1x1x1xf32, #tpu.memory_space<vmem>>, vector<1x1x1xf32>,
    return
  }
  func.func @transform_0(%arg0: i32) -> (i32, i32, i32) {
    %c0_i32 = arith.constant 0 : i32
    %c0_i32_0 = arith.constant 0 : i32
    %c0_i32_1 = arith.constant 0 : i32
    return %arg0, %c0_i32, %c0_i32_0 : i32, i32, i32
  }
  func.func @transform_1(%arg0: i32) -> (i32, i32) {
    %c0_i32 = arith.constant 0 : i32
    %c0_i32_0 = arith.constant 0 : i32
    %c0_i32_1 = arith.constant 0 : i32
    return %c0_i32, %c0_i32_0 : i32, i32
  }
  func.func @transform_2(%arg0: i32) -> (i32, i32) {
    %c0_i32 = arith.constant 0 : i32
    %c0_i32_0 = arith.constant 0 : i32
    %c0_i32_1 = arith.constant 0 : i32
    return %c0_i32, %c0_i32_0 : i32, i32
  }
  func.func @transform_3(%arg0: i32) -> (i32, i32, i32) {
    %c0_i32 = arith.constant 0 : i32
    %c0_i32_0 = arith.constant 0 : i32
    %c0_i32_1 = arith.constant 0 : i32
    return %arg0, %c0_i32, %c0_i32_0 : i32, i32, i32
  }
}

</mosaic_0001>

<bundles_post_ra>
// kernel: transformer_mha_forward.3
= control target key start
LH: loop header
LB: loop body
LE: loop exit
PB: predicated region body
PF: predicated region fallthrough
CT: control target
= control target key end

     0   :  { %s569_s14 = smov 0   ;;  %s994_s0 = inlined_call_operand.vmem [shape: f32[2,1,1024], index: 0, kind: input, shape index: {}]   ;;  %s995_s1 = inlined_call_operand.vmem [shape: f32[1024,1], index: 1, kind: input, shape index: {}]   ;;  %s996_s2 = inlined_call_operand.<no memory space> [shape: f32[1,1], index: 2, kind: input, shape index: {}]   ;;  %s997_s3 = inlined_call_operand.vmem [shape: f32[2,1,1], index: 3, kind: output, shape index: {}]  }
   0x1   :  { %v8_v0 = vstv %s996_s2 }
   0x2   :  { %9 = vst [vmem:[#allocation2] sm:$0x1] %v8_v0 }
   0x3 LB: > { %s522_s15 = sadd.s32 4294967295, %s544_s14   ;;  %p526_p0 = scmp.ge.s32.totalorder %s544_s14, 1  ;;  %s544_s14 = sphi %s569_s14, %s15_s14  }
   0x4   : > { %p138_p1 = scmp.lt.s32.totalorder %s544_s14, 3 }
   0x6   : > { %p139_p2 = pnand %p526_p0, %p138_p1 }
   0x7   : > { %p801_p3 = scmp.lt.s32.totalorder (!%p139_p2), %s522_s15, 1 }
   0x8   : > { %142 = sbr.rel (%p139_p2) target bundleno = 216 (0xd8), region = 32 }
   0xd   : > { %v214_v1 = vld [vmem:[%s995_s1 + $0x178] sm:$0xff]  ;;  %v213_v3 = vld [vmem:[%s995_s1 + $0x170] sm:$0xff]  ;;  %v212_v7 = vld [vmem:[%s995_s1 + $0x168] sm:$0xff]  ;;  %s1000_s15 = smov (!%p801_p3, %s522_s15), 1  ;;  %vm473_vm0 = vcmask 0  }
   0xe   : > { %v182_v2 = vld [vmem:[%s995_s1 + $0x78] sm:$0xff]  ;;  %353 = vmatpush.msra.mxu2 %v214_v1  ;;  %v181_v5 = vld [vmem:[%s995_s1 + $0x70] sm:$0xff]  ;;  %v180_v9 = vld [vmem:[%s995_s1 + $0x68] sm:$0xff]  ;;  %s527_s13 = sshll.u32 %s1000_s15, 3  ;;  %s165_s18 = scalar_lea.vmem %s997_s3, %s1000_s15 }
   0xf   : > { %313 = vmatpush.msra.mxu0 %v182_v2  ;;  %v230_v4 = vld [vmem:[%s995_s1 + $0x1f8] sm:$0xff]  ;;  %v229_v8 = vld [vmem:[%s995_s1 + $0x1f0] sm:$0xff]  ;;  %v228_v11 = vld [vmem:[%s995_s1 + $0x1e8] sm:$0xff]  ;;  %s162_s29 = scalar_lea.vmem %s994_s0, %s527_s13 }
  0x10   : > { %v198_v6 = vld [vmem:[%s995_s1 + $0xf8] sm:$0xff]  ;;  %373 = vmatpush.msra.mxu3 %v230_v4  ;;  %354 = vmatpush.msra.mxu2 %v213_v3  ;;  %v197_v10 = vld [vmem:[%s995_s1 + $0xf0] sm:$0xff]  ;;  %v211_v12 = vld [vmem:[%s995_s1 + $0x160] sm:$0xff] }
  0x11   : > { %333 = vmatpush.msra.mxu1 %v198_v6  ;;  %314 = vmatpush.msra.mxu0 %v181_v5  ;;  %v179_v13 = vld [vmem:[%s995_s1 + $0x60] sm:$0xff]  ;;  %v196_v14 = vld [vmem:[%s995_s1 + $0xe8] sm:$0xff]  ;;  %v210_v17 = vld [vmem:[%s995_s1 + $0x158] sm:$0xff] }
  0x12   : > { %374 = vmatpush.msra.mxu3 %v229_v8  ;;  %355 = vmatpush.msra.mxu2 %v212_v7  ;;  %v227_v15 = vld [vmem:[%s995_s1 + $0x1e0] sm:$0xff]  ;;  %v178_v18 = vld [vmem:[%s995_s1 + $0x58] sm:$0xff]  ;;  %v209_v21 = vld [vmem:[%s995_s1 + $0x150] sm:$0xff] }
  0x13   : > { %334 = vmatpush.msra.mxu1 %v197_v10  ;;  %315 = vmatpush.msra.mxu0 %v180_v9  ;;  %v195_v16 = vld [vmem:[%s995_s1 + $0xe0] sm:$0xff]  ;;  %v226_v19 = vld [vmem:[%s995_s1 + $0x1d8] sm:$0xff]  ;;  %v177_v22 = vld [vmem:[%s995_s1 + $0x50] sm:$0xff] }
  0x14   : > { %375 = vmatpush.msra.mxu3 %v228_v11  ;;  %356 = vmatpush.msra.mxu2 %v211_v12  ;;  %v194_v20 = vld [vmem:[%s995_s1 + $0xd8] sm:$0xff]  ;;  %v225_v23 = vld [vmem:[%s995_s1 + $0x1d0] sm:$0xff]  ;;  %v208_v25 = vld [vmem:[%s995_s1 + $0x148] sm:$0xff] }
  0x15   : > { %335 = vmatpush.msra.mxu1 %v196_v14  ;;  %316 = vmatpush.msra.mxu0 %v179_v13  ;;  %v193_v24 = vld [vmem:[%s995_s1 + $0xd0] sm:$0xff]  ;;  %v176_v26 = vld [vmem:[%s995_s1 + $0x48] sm:$0xff]  ;;  %v207_v29 = vld [vmem:[%s995_s1 + $0x140] sm:$0xff] }
  0x16   : > { %376 = vmatpush.msra.mxu3 %v227_v15  ;;  %357 = vmatpush.msra.mxu2 %v210_v17  ;;  %v224_v27 = vld [vmem:[%s995_s1 + $0x1c8] sm:$0xff]  ;;  %v175_v30 = vld [vmem:[%s995_s1 + $0x40] sm:$0xff]  ;;  %v206_v33 = vld [vmem:[%s995_s1 + $0x138] sm:$0xff] }
  0x17   : > { %336 = vmatpush.msra.mxu1 %v195_v16  ;;  %317 = vmatpush.msra.mxu0 %v178_v18  ;;  %v192_v28 = vld [vmem:[%s995_s1 + $0xc8] sm:$0xff]  ;;  %v223_v31 = vld [vmem:[%s995_s1 + $0x1c0] sm:$0xff]  ;;  %v174_v34 = vld [vmem:[%s995_s1 + $0x38] sm:$0xff] }
  0x18   : > { %377 = vmatpush.msra.mxu3 %v226_v19  ;;  %358 = vmatpush.msra.mxu2 %v209_v21  ;;  %v191_v32 = vld [vmem:[%s995_s1 + $0xc0] sm:$0xff]  ;;  %v222_v35 = vld [vmem:[%s995_s1 + $0x1b8] sm:$0xff]  ;;  %v205_v37 = vld [vmem:[%s995_s1 + $0x130] sm:$0xff] }
  0x19   : > { %337 = vmatpush.msra.mxu1 %v194_v20  ;;  %318 = vmatpush.msra.mxu0 %v177_v22  ;;  %v190_v36 = vld [vmem:[%s995_s1 + $0xb8] sm:$0xff]  ;;  %v173_v38 = vld [vmem:[%s995_s1 + $0x30] sm:$0xff]  ;;  %v204_v41 = vld [vmem:[%s995_s1 + $0x128] sm:$0xff] }
  0x1a   : > { %378 = vmatpush.msra.mxu3 %v225_v23  ;;  %359 = vmatpush.msra.mxu2 %v208_v25  ;;  %v221_v39 = vld [vmem:[%s995_s1 + $0x1b0] sm:$0xff]  ;;  %v172_v42 = vld [vmem:[%s995_s1 + $0x28] sm:$0xff]  ;;  %v203_v45 = vld [vmem:[%s995_s1 + $0x120] sm:$0xff] }
  0x1b   : > { %338 = vmatpush.msra.mxu1 %v193_v24  ;;  %319 = vmatpush.msra.mxu0 %v176_v26  ;;  %v189_v40 = vld [vmem:[%s995_s1 + $0xb0] sm:$0xff]  ;;  %v220_v43 = vld [vmem:[%s995_s1 + $0x1a8] sm:$0xff]  ;;  %v171_v46 = vld [vmem:[%s995_s1 + $0x20] sm:$0xff] }
  0x1c   : > { %379 = vmatpush.msra.mxu3 %v224_v27  ;;  %360 = vmatpush.msra.mxu2 %v207_v29  ;;  %v188_v44 = vld [vmem:[%s995_s1 + $0xa8] sm:$0xff]  ;;  %v219_v47 = vld [vmem:[%s995_s1 + $0x1a0] sm:$0xff]  ;;  %v202_v49 = vld [vmem:[%s995_s1 + $0x118] sm:$0xff] }
  0x1d   : > { %339 = vmatpush.msra.mxu1 %v192_v28  ;;  %320 = vmatpush.msra.mxu0 %v175_v30  ;;  %v187_v48 = vld [vmem:[%s995_s1 + $0xa0] sm:$0xff]  ;;  %v170_v50 = vld [vmem:[%s995_s1 + $0x18] sm:$0xff]  ;;  %v201_v53 = vld [vmem:[%s995_s1 + $0x110] sm:$0xff] }
  0x1e   : > { %380 = vmatpush.msra.mxu3 %v223_v31  ;;  %361 = vmatpush.msra.mxu2 %v206_v33  ;;  %v218_v51 = vld [vmem:[%s995_s1 + $0x198] sm:$0xff]  ;;  %v169_v54 = vld [vmem:[%s995_s1 + $0x10] sm:$0xff]  ;;  %v200_v57 = vld [vmem:[%s995_s1 + $0x108] sm:$0xff] }
  0x1f   : > { %340 = vmatpush.msra.mxu1 %v191_v32  ;;  %321 = vmatpush.msra.mxu0 %v174_v34  ;;  %v186_v52 = vld [vmem:[%s995_s1 + $0x98] sm:$0xff]  ;;  %v217_v55 = vld [vmem:[%s995_s1 + $0x190] sm:$0xff]  ;;  %v168_v58 = vld [vmem:[%s995_s1 + $0x8] sm:$0xff] }
  0x20   : > { %381 = vmatpush.msra.mxu3 %v222_v35  ;;  %362 = vmatpush.msra.mxu2 %v205_v37  ;;  %v185_v56 = vld [vmem:[%s995_s1 + $0x90] sm:$0xff]  ;;  %v216_v59 = vld [vmem:[%s995_s1 + $0x188] sm:$0xff]  ;;  %v199_v61 = vld [vmem:[%s995_s1 + $0x100] sm:$0xff] }
  0x21   : > { %341 = vmatpush.msra.mxu1 %v190_v36  ;;  %322 = vmatpush.msra.mxu0 %v173_v38  ;;  %v184_v60 = vld [vmem:[%s995_s1 + $0x88] sm:$0xff]  ;;  %v167_v62 = vld [vmem:[%s995_s1] sm:$0xff]  ;;  %v278_v63 = vld [vmem:[%s995_s1 + $0x378] sm:$0xff] }
  0x22   : > { %382 = vmatpush.msra.mxu3 %v221_v39  ;;  %363 = vmatpush.msra.mxu2 %v204_v41  ;;  %v215_v0 = vld [vmem:[%s995_s1 + $0x180] sm:$0xff]  ;;  %v246_v1 = vld [vmem:[%s995_s1 + $0x278] sm:$0xff]  ;;  %v277_v3 = vld [vmem:[%s995_s1 + $0x370] sm:$0xff] }
  0x23   : > { %342 = vmatpush.msra.mxu1 %v189_v40  ;;  %323 = vmatpush.msra.mxu0 %v172_v42  ;;  %v294_v2 = vld [vmem:[%s995_s1 + $0x3f8] sm:$0xff]  ;;  %v183_v4 = vld [vmem:[%s995_s1 + $0x80] sm:$0xff]  ;;  %v245_v5 = vld [vmem:[%s995_s1 + $0x270] sm:$0xff] }
  0x24   : > { %383 = vmatpush.msra.mxu3 %v220_v43  ;;  %364 = vmatpush.msra.mxu2 %v203_v45  ;;  %v262_v6 = vld [vmem:[%s995_s1 + $0x2f8] sm:$0xff]  ;;  %v276_v7 = vld [vmem:[%s995_s1 + $0x368] sm:$0xff]  ;;  %v293_v8 = vld [vmem:[%s995_s1 + $0x3f0] sm:$0xff] }
  0x25   : > { %343 = vmatpush.msra.mxu1 %v188_v44  ;;  %324 = vmatpush.msra.mxu0 %v171_v46  ;;  %v244_v9 = vld [vmem:[%s995_s1 + $0x268] sm:$0xff]  ;;  %v261_v10 = vld [vmem:[%s995_s1 + $0x2f0] sm:$0xff]  ;;  %v275_v11 = vld [vmem:[%s995_s1 + $0x360] sm:$0xff] }
  0x26   : > { %384 = vmatpush.msra.mxu3 %v219_v47  ;;  %365 = vmatpush.msra.mxu2 %v202_v49  ;;  %v292_v12 = vld [vmem:[%s995_s1 + $0x3e8] sm:$0xff]  ;;  %v243_v13 = vld [vmem:[%s995_s1 + $0x260] sm:$0xff]  ;;  %v274_v15 = vld [vmem:[%s995_s1 + $0x358] sm:$0xff] }
  0x27   : > { %344 = vmatpush.msra.mxu1 %v187_v48  ;;  %325 = vmatpush.msra.mxu0 %v170_v50  ;;  %v260_v14 = vld [vmem:[%s995_s1 + $0x2e8] sm:$0xff]  ;;  %v291_v16 = vld [vmem:[%s995_s1 + $0x3e0] sm:$0xff]  ;;  %v242_v17 = vld [vmem:[%s995_s1 + $0x258] sm:$0xff] }
  0x28   : > { %385 = vmatpush.msra.mxu3 %v218_v51  ;;  %366 = vmatpush.msra.mxu2 %v201_v53  ;;  %v259_v18 = vld [vmem:[%s995_s1 + $0x2e0] sm:$0xff]  ;;  %v273_v19 = vld [vmem:[%s995_s1 + $0x350] sm:$0xff]  ;;  %v290_v20 = vld [vmem:[%s995_s1 + $0x3d8] sm:$0xff] }
  0x29   : > { %345 = vmatpush.msra.mxu1 %v186_v52  ;;  %326 = vmatpush.msra.mxu0 %v169_v54  ;;  %v241_v21 = vld [vmem:[%s995_s1 + $0x250] sm:$0xff]  ;;  %v258_v22 = vld [vmem:[%s995_s1 + $0x2d8] sm:$0xff]  ;;  %v272_v23 = vld [vmem:[%s995_s1 + $0x348] sm:$0xff] }
  0x2a   : > { %386 = vmatpush.msra.mxu3 %v217_v55  ;;  %367 = vmatpush.msra.mxu2 %v200_v57  ;;  %v289_v24 = vld [vmem:[%s995_s1 + $0x3d0] sm:$0xff]  ;;  %v240_v25 = vld [vmem:[%s995_s1 + $0x248] sm:$0xff]  ;;  %v271_v27 = vld [vmem:[%s995_s1 + $0x340] sm:$0xff] }
  0x2b   : > { %346 = vmatpush.msra.mxu1 %v185_v56  ;;  %327 = vmatpush.msra.mxu0 %v168_v58  ;;  %v257_v26 = vld [vmem:[%s995_s1 + $0x2d0] sm:$0xff]  ;;  %v288_v28 = vld [vmem:[%s995_s1 + $0x3c8] sm:$0xff]  ;;  %v239_v29 = vld [vmem:[%s995_s1 + $0x240] sm:$0xff] }
  0x2c   : > { %387 = vmatpush.msra.mxu3 %v216_v59  ;;  %368 = vmatpush.msra.mxu2 %v199_v61  ;;  %v256_v30 = vld [vmem:[%s995_s1 + $0x2c8] sm:$0xff]  ;;  %v270_v31 = vld [vmem:[%s995_s1 + $0x338] sm:$0xff]  ;;  %v287_v32 = vld [vmem:[%s995_s1 + $0x3c0] sm:$0xff] }
  0x2d   : > { %347 = vmatpush.msra.mxu1 %v184_v60  ;;  %328 = vmatpush.msra.mxu0 %v167_v62  ;;  %v238_v33 = vld [vmem:[%s995_s1 + $0x238] sm:$0xff]  ;;  %v255_v34 = vld [vmem:[%s995_s1 + $0x2c0] sm:$0xff]  ;;  %v269_v35 = vld [vmem:[%s995_s1 + $0x330] sm:$0xff] }
  0x2e   : > { %433 = vmatpush.msrb.mxu2 %v278_v63  ;;  %388 = vmatpush.msra.mxu3 %v215_v0  ;;  %v286_v36 = vld [vmem:[%s995_s1 + $0x3b8] sm:$0xff]  ;;  %v237_v37 = vld [vmem:[%s995_s1 + $0x230] sm:$0xff]  ;;  %v899_v39 = vld [vmem:[%s162_s29] sm:$0xff] }
  0x2f   : > { %393 = vmatpush.msrb.mxu0 %v246_v1  ;;  %348 = vmatpush.msra.mxu1 %v183_v4  ;;  %v254_v38 = vld [vmem:[%s995_s1 + $0x2b8] sm:$0xff]  ;;  %v268_v40 = vld [vmem:[%s995_s1 + $0x328] sm:$0xff]  ;;  %v285_v41 = vld [vmem:[%s995_s1 + $0x3b0] sm:$0xff]  ;;  %v299_v46 = vperm.slane %v899_v39, 2  ;;  %v297_v50 = vperm.slane %v899_v39, 0  ;;  %v300_v52 = vperm.slane %v899_v39, 3 }
  0x30   : > { %453 = vmatpush.msrb.mxu3 %v294_v2  ;;  %434 = vmatpush.msrb.mxu2 %v277_v3  ;;  %v236_v42 = vld [vmem:[%s995_s1 + $0x228] sm:$0xff]  ;;  %v253_v43 = vld [vmem:[%s995_s1 + $0x2b0] sm:$0xff]  ;;  %v267_v44 = vld [vmem:[%s995_s1 + $0x320] sm:$0xff]  ;;  %v298_v56 = vperm.slane %v899_v39, 1  ;;  %v303_v2 = vperm.slane %v899_v39, 6 }
  0x31   : > { %394 = vmatpush.msrb.mxu0 %v245_v5  ;;  %413 = vmatpush.msrb.mxu1 %v262_v6  ;;  %v284_v45 = vld [vmem:[%s995_s1 + $0x3a8] sm:$0xff]  ;;  %v235_v47 = vld [vmem:[%s995_s1 + $0x220] sm:$0xff]  ;;  %v266_v49 = vld [vmem:[%s995_s1 + $0x318] sm:$0xff]  ;;  %v301_v6 = vperm.slane %v899_v39, 4 }
  0x32   : > { %435 = vmatpush.msrb.mxu2 %v276_v7  ;;  %454 = vmatpush.msrb.mxu3 %v293_v8  ;;  %v252_v48 = vld [vmem:[%s995_s1 + $0x2a8] sm:$0xff]  ;;  %v283_v51 = vld [vmem:[%s995_s1 + $0x3a0] sm:$0xff]  ;;  %v234_v53 = vld [vmem:[%s995_s1 + $0x218] sm:$0xff]  ;;  %v304_v7 = vperm.slane %v899_v39, 7 }
  0x33   : > { %395 = vmatpush.msrb.mxu0 %v244_v9  ;;  %414 = vmatpush.msrb.mxu1 %v261_v10  ;;  %v251_v54 = vld [vmem:[%s995_s1 + $0x2a0] sm:$0xff]  ;;  %v265_v55 = vld [vmem:[%s995_s1 + $0x310] sm:$0xff]  ;;  %v282_v57 = vld [vmem:[%s995_s1 + $0x398] sm:$0xff]  ;;  %v302_v9 = vperm.slane %v899_v39, 5 }
  0x34   : > { %436 = vmatpush.msrb.mxu2 %v275_v11  ;;  %455 = vmatpush.msrb.mxu3 %v292_v12  ;;  %v233_v58 = vld [vmem:[%s995_s1 + $0x210] sm:$0xff]  ;;  %v250_v59 = vld [vmem:[%s995_s1 + $0x298] sm:$0xff]  ;;  %v264_v60 = vld [vmem:[%s995_s1 + $0x308] sm:$0xff] }
  0x35   : > { %396 = vmatpush.msrb.mxu0 %v243_v13  ;;  %415 = vmatpush.msrb.mxu1 %v260_v14  ;;  %v281_v61 = vld [vmem:[%s995_s1 + $0x390] sm:$0xff]  ;;  %v232_v62 = vld [vmem:[%s995_s1 + $0x208] sm:$0xff]  ;;  %v263_v0 = vld [vmem:[%s995_s1 + $0x300] sm:$0xff] }
  0x36   : > { %437 = vmatpush.msrb.mxu2 %v274_v15  ;;  %456 = vmatpush.msrb.mxu3 %v291_v16  ;;  %v249_v63 = vld [vmem:[%s995_s1 + $0x290] sm:$0xff]  ;;  %v280_v1 = vld [vmem:[%s995_s1 + $0x388] sm:$0xff]  ;;  %v231_v3 = vld [vmem:[%s995_s1 + $0x200] sm:$0xff] }
  0x37   : > { %397 = vmatpush.msrb.mxu0 %v242_v17  ;;  %416 = vmatpush.msrb.mxu1 %v259_v18  ;;  %v248_v4 = vld [vmem:[%s995_s1 + $0x288] sm:$0xff]  ;;  %v279_v5 = vld [vmem:[%s995_s1 + $0x380] sm:$0xff] }
  0x38   : > { %438 = vmatpush.msrb.mxu2 %v273_v19  ;;  %457 = vmatpush.msrb.mxu3 %v290_v20  ;;  %v247_v8 = vld [vmem:[%s995_s1 + $0x280] sm:$0xff] }
  0x39   : > { %398 = vmatpush.msrb.mxu0 %v241_v21  ;;  %417 = vmatpush.msrb.mxu1 %v258_v22  ;;  %v295_v10 = vld [vmem:[#allocation2] sm:$0x1] }
  0x3a   : > { %439 = vmatpush.msrb.mxu2 %v272_v23  ;;  %458 = vmatpush.msrb.mxu3 %v289_v24 }
  0x3b   : > { %399 = vmatpush.msrb.mxu0 %v240_v25  ;;  %418 = vmatpush.msrb.mxu1 %v257_v26 }
  0x3c   : > { %440 = vmatpush.msrb.mxu2 %v271_v27  ;;  %459 = vmatpush.msrb.mxu3 %v288_v28 }
  0x3d   : > { %400 = vmatpush.msrb.mxu0 %v239_v29  ;;  %419 = vmatpush.msrb.mxu1 %v256_v30 }
  0x3e   : > { %441 = vmatpush.msrb.mxu2 %v270_v31  ;;  %460 = vmatpush.msrb.mxu3 %v287_v32 }
  0x3f   : > { %401 = vmatpush.msrb.mxu0 %v238_v33  ;;  %420 = vmatpush.msrb.mxu1 %v255_v34 }
  0x40   : > { %442 = vmatpush.msrb.mxu2 %v269_v35  ;;  %461 = vmatpush.msrb.mxu3 %v286_v36 }
  0x41   : > { %402 = vmatpush.msrb.mxu0 %v237_v37  ;;  %421 = vmatpush.msrb.mxu1 %v254_v38 }
  0x42   : > { %443 = vmatpush.msrb.mxu2 %v268_v40  ;;  %462 = vmatpush.msrb.mxu3 %v285_v41 }
  0x43   : > { %403 = vmatpush.msrb.mxu0 %v236_v42  ;;  %422 = vmatpush.msrb.mxu1 %v253_v43 }
  0x44   : > { %444 = vmatpush.msrb.mxu2 %v267_v44  ;;  %463 = vmatpush.msrb.mxu3 %v284_v45 }
  0x45   : > { %369 = vmatmul.f32.vlgmr.msra.gmra.mxu2 %v299_v46  ;;  %404 = vmatpush.msrb.mxu0 %v235_v47 }
  0x46   : > { %423 = vmatpush.msrb.mxu1 %v252_v48  ;;  %445 = vmatpush.msrb.mxu2 %v266_v49 }
  0x47   : > { %464 = vmatpush.msrb.mxu3 %v283_v51  ;;  %329 = vmatmul.f32.vlgmr.msra.gmra.mxu0 %v297_v50 }
  0x48   : > { %389 = vmatmul.f32.vlgmr.msra.gmra.mxu3 %v300_v52  ;;  %405 = vmatpush.msrb.mxu0 %v234_v53 }
  0x49   : > { %424 = vmatpush.msrb.mxu1 %v251_v54  ;;  %446 = vmatpush.msrb.mxu2 %v265_v55 }
  0x4a   : > { %465 = vmatpush.msrb.mxu3 %v282_v57  ;;  %349 = vmatmul.f32.vlgmr.msra.gmra.mxu1 %v298_v56 }
  0x4b   : > { %406 = vmatpush.msrb.mxu0 %v233_v58  ;;  %425 = vmatpush.msrb.mxu1 %v250_v59 }
  0x4c   : > { %447 = vmatpush.msrb.mxu2 %v264_v60  ;;  %466 = vmatpush.msrb.mxu3 %v281_v61 }
  0x4d   : > { %407 = vmatpush.msrb.mxu0 %v232_v62  ;;  %426 = vmatpush.msrb.mxu1 %v249_v63 }
  0x4e   : > { %448 = vmatpush.msrb.mxu2 %v263_v0  ;;  %467 = vmatpush.msrb.mxu3 %v280_v1 }
  0x4f   : > { %449 = vmatmul.f32.vlgmr.msrb.gmra.mxu2 %v303_v2  ;;  %408 = vmatpush.msrb.mxu0 %v231_v3 }
  0x50   : > { %427 = vmatpush.msrb.mxu1 %v248_v4  ;;  %468 = vmatpush.msrb.mxu3 %v279_v5 }
  0x51   : > { %409 = vmatmul.f32.vlgmr.msrb.gmra.mxu0 %v301_v6  ;;  %469 = vmatmul.f32.vlgmr.msrb.gmra.mxu3 %v304_v7 }
  0x52   : > { %428 = vmatpush.msrb.mxu1 %v247_v8 }
  0x53   : > { %429 = vmatmul.f32.vlgmr.msrb.gmra.mxu1 %v302_v9 }
  0xc4   : > { %v330_v11 = vpop.f32.mrf.mxu0 }
  0xc5   : > { %v331_v12 = vadd.f32 %v330_v11, %v295_v10 }
  0xc7   : > { %v350_v13 = vpop.f32.mrf.mxu1 }
  0xc8   : > { %v351_v14 = vadd.f32 %v350_v13, %v331_v12  ;;  %v370_v15 = vpop.f32.mrf.mxu2 }
  0xca   : > { %v371_v16 = vadd.f32 %v370_v15, %v351_v14 }
  0xcb   : > { %v390_v17 = vpop.f32.mrf.mxu3 }
  0xcc   : > { %v391_v18 = vadd.f32 %v390_v17, %v371_v16 }
  0xce   : > { %v410_v19 = vpop.f32.mrf.mxu0 }
  0xcf   : > { %v411_v20 = vadd.f32 %v410_v19, %v391_v18 }
  0xd0   : > { %v430_v21 = vpop.f32.mrf.mxu1 }
  0xd1   : > { %v431_v22 = vadd.f32 %v430_v21, %v411_v20 }
  0xd2   : > { %v450_v23 = vpop.f32.mrf.mxu2 }
  0xd3   : > { %v451_v24 = vadd.f32 %v450_v23, %v431_v22 }
  0xd4   : > { %v470_v25 = vpop.f32.mrf.mxu3 }
  0xd5   : > { %v471_v26 = vadd.f32 %v470_v25, %v451_v24 }
  0xd7   : > { %474 = vst.msk [vmem:[%s165_s18] sm:$0x1] %vm473_vm0, %v471_v26 }
  0xd8 PF: > { %s15_s14 = sadd.s32 1, %s544_s14  }
  0xd9   : > { %p12_p4 = scmp.ge.s32.totalorder %s15_s14, 4  }
  0xdb   :  { %14 = sbr.rel (!%p12_p4) target bundleno = 3 (0x3), region = 62 }

// kernel: transformer_mha_forward.2
= control target key start
LH: loop header
LB: loop body
LE: loop exit
PB: predicated region body
PF: predicated region fallthrough
CT: control target
= control target key end

     0   :  { %s649_s12 = smov 0   ;;  %s748_s0 = inlined_call_operand.vmem [shape: f32[16,32], index: 0, kind: input, shape index: {}]   ;;  %s749_s1 = inlined_call_operand.vmem [shape: f32[32,384], index: 1, kind: input, shape index: {}]   ;;  %s750_s2 = inlined_call_operand.vmem [shape: f32[1,384], index: 2, kind: input, shape index: {}]   ;;  %s751_s3 = inlined_call_operand.vmem [shape: f32[2,8,128], index: 3, kind: output, shape index: {}]  }
   0x1 LB: > { %s573_s13 = sadd.s32 4294967295, %s624_s12   ;;  %p577_p0 = scmp.ge.s32.totalorder %s624_s12, 1  ;;  %s624_s12 = sphi %s649_s12, %s13_s12  }
   0x2   : > { %p136_p1 = scmp.lt.s32.totalorder %s624_s12, 3 }
   0x4   : > { %p137_p2 = pnand %p577_p0, %p136_p1 }
   0x5   : > { %p158_p3 = scmp.lt.s32.totalorder (!%p137_p2), %s573_s13, 1  ;;  %s626_s19 = smov (!%p137_p2), 64  }
   0x6   : > { %140 = sbr.rel (%p137_p2) target bundleno = 694 (0x2b6), region = 32  ;;  %s627_s20 = smov (!%p137_p2), 96  }
   0x7   : > { %s628_s21 = smov (!%p137_p2), 32  }
   0xb   : > { %v177_v0 = vld [vmem:[%s749_s1 + $0x50] sm:$0xff]  ;;  %v176_v1 = vld [vmem:[%s749_s1 + $0x48] sm:$0xff]  ;;  %v174_v2 = vld [vmem:[%s749_s1 + $0x38] sm:$0xff]  ;;  %s753_s13 = smov (!%p158_p3, %s573_s13), 1  ;;  %vm187_vm0 = vcmask 261120   ;;  %vm375_vm1 = vcmask 64512  }
   0xc   : > { %223 = vmatpush.msra.mxu1 %v177_v0  ;;  %203 = vmatpush.msra.mxu0 %v176_v1  ;;  %v173_v3 = vld [vmem:[%s749_s1 + $0x30] sm:$0xff]  ;;  %v171_v4 = vld [vmem:[%s749_s1 + $0x20] sm:$0xff]  ;;  %v170_v5 = vld [vmem:[%s749_s1 + $0x18] sm:$0xff]  ;;  %s578_s28 = sshll.u32 %s753_s13, 3  ;;  %vm515_vm2 = vcmask 523264   ;;  %vm517_vm3 = vcmask 785408  }
   0xd   : > { %v168_v6 = vld [vmem:[%s749_s1 + $0x8] sm:$0xff]  ;;  %v167_v7 = vld [vmem:[%s749_s1] sm:$0xff]  ;;  %s161_s6 = scalar_lea.vmem %s748_s0, %s578_s28  ;;  %v178_v9 = vld [vmem:[%s749_s1 + $0x58] sm:$0xff]  ;;  %s165_s24 = scalar_lea.vmem %s751_s3, %s578_s28 }
   0xe   : > { %224 = vmatpush.msra.mxu1 %v174_v2  ;;  %204 = vmatpush.msra.mxu0 %v173_v3  ;;  %v166_v8 = vld [vmem:[%s161_s6] sm:$0xff]  ;;  %v172_v11 = vld [vmem:[%s749_s1 + $0x28] sm:$0xff]  ;;  %v169_v12 = vld [vmem:[%s749_s1 + $0x10] sm:$0xff] }
   0xf   : > { %v175_v10 = vld [vmem:[%s749_s1 + $0x40] sm:$0xff]  ;;  %243 = vmatpush.msra.mxu2 %v178_v9 }
  0x10   : > { %225 = vmatpush.msra.mxu1 %v171_v4  ;;  %205 = vmatpush.msra.mxu0 %v170_v5  ;;  %v179_v13 = vld [vmem:[%s750_s2] sm:$0x7] }
  0x11   : > { %244 = vmatpush.msra.mxu2 %v175_v10  ;;  %v182_v14 = vperm.slane %v179_v13, 1  ;;  %v181_v15 = vperm.slane %v179_v13, 0  ;;  %v183_v20 = vperm.slane %v179_v13, 2 }
  0x12   : > { %226 = vmatpush.msra.mxu1 %v168_v6  ;;  %206 = vmatpush.msra.mxu0 %v167_v7 }
  0x13   : > { %581 = vmatmul.msk.f32.vlgmr.msra.gmra.mxu1 %vm187_vm0, %v166_v8  ;;  %580 = vmatmul.msk.f32.vlgmr.msra.gmra.mxu0 %vm187_vm0, %v166_v8 }
  0x14   : > { %245 = vmatpush.msra.mxu2 %v172_v11 }
  0x16   : > { %246 = vmatpush.msra.mxu2 %v169_v12 }
  0x17   : > { %582 = vmatmul.msk.f32.vlgmr.msra.gmra.mxu2 %vm187_vm0, %v166_v8 }
  0x90   : > { %v228_v16 = vpop.f32.mrf.mxu1  ;;  %v208_v17 = vpop.f32.mrf.mxu0 }
  0x91   : > { %v229_v18 = vadd.f32 %v228_v16, %v182_v14  ;;  %v209_v19 = vadd.f32 %v208_v17, %v181_v15 }
  0x93   : > { %261 = vrot.lane.b32.xlu1 %v229_v18, %s626_s19  ;;  %259 = vrot.lane.b32.xlu0 %v229_v18, %s627_s20 }
  0x94   : > { %583 = vmatpush.xpose.msk.msra.mxu3 %vm187_vm0, %v229_v18  ;;  %254 = vrot.lane.b32.xlu2 %v209_v19, %s626_s19 }
  0x97   : > { %584 = vmatmul.msk.f32.vlgmr.msra.gmra.mxu3 %vm187_vm0, %v209_v19 }
  0x9a   : > { %v248_v24 = vpop.f32.mrf.mxu2 }
  0x9b   : > { %263 = vrot.lane.b32.xlu1 %v229_v18, %s628_s21  ;;  %252 = vrot.lane.b32.xlu0 %v209_v19, %s627_s20  ;;  %v249_v25 = vadd.f32 %v248_v24, %v183_v20 }
  0x9c   : > { %256 = vrot.lane.b32.xlu2 %v209_v19, %s628_s21 }
  0x9d   : > { %428 = vmatpush.msrb.mxu2 %v249_v25 }
  0xa3   : > { %269 = vrot.lane.b32.xlu1 %v249_v25, %s626_s19  ;;  %266 = vrot.lane.b32.xlu0 %v249_v25, %s627_s20 }
  0xa4   : > { %272 = vrot.lane.b32.xlu2 %v249_v25, %s628_s21 }
  0xee   : > { %v255_v23 = vpop.permute.xlu2 %254 }
  0xf6   : > { %v257_v28 = vpop.permute.xlu2 %256 }
  0xfe   : > { %v273_v29 = vpop.permute.xlu2 %272 }
 0x105   : > { %v262_v21 = vpop.permute.xlu1 %261  ;;  %v260_v22 = vpop.permute.xlu0 %259 }
 0x106   : > { %585 = vmatpush.xpose.msk.msrb.mxu3 %vm187_vm0, %v260_v22  ;;  %587 = vmatpush.xpose.msk.msrb.mxu0 %vm187_vm0, %v262_v21 }
 0x109   : > { %588 = vmatmul.msk.f32.vlgmr.msrb.gmra.mxu0 %vm187_vm0, %v255_v23 }
 0x10d   : > { %v264_v26 = vpop.permute.xlu1 %263  ;;  %v253_v27 = vpop.permute.xlu0 %252 }
 0x10e   : > { %586 = vmatmul.msk.f32.vlgmr.msrb.gmra.mxu3 %vm187_vm0, %v253_v27  ;;  %589 = vmatpush.xpose.msk.msrb.mxu1 %vm187_vm0, %v264_v26 }
 0x111   : > { %590 = vmatmul.msk.f32.vlgmr.msrb.gmra.mxu1 %vm187_vm0, %v257_v28 }
 0x112   : > { %497 = vmatpush.msra.mxu1 %v273_v29 }
 0x115   : > { %v270_v49 = vpop.permute.xlu1 %269  ;;  %v267_v50 = vpop.permute.xlu0 %266 }
 0x116   : > { %451 = vmatpush.msra.mxu3 %v267_v50  ;;  %474 = vmatpush.msra.mxu0 %v270_v49 }
 0x11a   : > { %v296_v30 = vpop.f32.mrf.mxu3 }
 0x11b   : > { %v371_v34 = vmul.f32 0.17677669, %v296_v30 }
 0x11d   : > { %v376_v39 = vsel %vm375_vm1, %v371_v34, -inf }
 0x186   : > { %v344_v31 = vpop.f32.mrf.mxu0 }
 0x187   : > { %v373_v35 = vmul.f32 0.17677669, %v344_v31 }
 0x189   : > { %v378_v40 = vsel %vm375_vm1, %v373_v35, -inf }
 0x18e   : > { %v368_v32 = vpop.f32.mrf.mxu1 }
 0x18f   : > { %v374_v33 = vmul.f32 0.17677669, %v368_v32 }
 0x191   : > { %v320_v36 = vpop.f32.mrf.mxu3  ;;  %v379_v37 = vsel %vm375_vm1, %v374_v33, -inf }
 0x192   : > { %v372_v38 = vmul.f32 0.17677669, %v320_v36  ;;  %v381_v42 = vmax.f32 %v378_v40, %v379_v37 }
 0x194   : > { %v377_v41 = vsel %vm375_vm1, %v372_v38, -inf }
 0x195   : > { %v380_v43 = vmax.f32 %v376_v39, %v377_v41 }
 0x197   : > { %v382_v44 = vmax.f32 %v380_v43, %v381_v42 }
 0x199   : > { %v383_v45 = vsub.f32 %v371_v34, %v382_v44  ;;  %v384_v46 = vsub.f32 %v372_v38, %v382_v44  ;;  %v385_v47 = vsub.f32 %v373_v35, %v382_v44  ;;  %v386_v48 = vsub.f32 %v374_v33, %v382_v44 }
 0x19b   : > { %v387_v51 = vmul.f32 1.442695, %v383_v45  ;;  %v389_v52 = vmul.f32 1.442695, %v384_v46  ;;  %v391_v53 = vmul.f32 1.442695, %v385_v47 }
 0x19c   : > { %v393_v54 = vmul.f32 1.442695, %v386_v48 }
 0x19d   : > { %608 = vpow2.f32 %v387_v51 }
 0x19e   : > { %610 = vpow2.f32 %v389_v52 }
 0x19f   : > { %612 = vpow2.f32 %v391_v53 }
 0x1a0   : > { %614 = vpow2.f32 %v393_v54 }
 0x1a3   : > { %v609_v55 = vpop.eup %608 }
 0x1a4   : > { %v611_v56 = vpop.eup %610  ;;  %v395_v57 = vsel %vm375_vm1, %v609_v55, 0.0 }
 0x1a5   : > { %v613_v58 = vpop.eup %612  ;;  %v396_v59 = vsel %vm375_vm1, %v611_v56, 0.0 }
 0x1a6   : > { %v615_v60 = vpop.eup %614  ;;  %v397_v61 = vadd.f32 %v396_v59, %v395_v57  ;;  %v398_v62 = vsel %vm375_vm1, %v613_v58, 0.0 }
 0x1a7   : > { %v400_v0 = vsel %vm375_vm1, %v615_v60, 0.0 }
 0x1a8   : > { %v399_v63 = vadd.f32 %v398_v62, %v397_v61 }
 0x1aa   : > { %v401_v1 = vadd.f32 %v400_v0, %v399_v63 }
 0x1ac   : > { %616 = vrcp.f32 %v401_v1 }
 0x1b2   : > { %v617_v2 = vpop.eup %616 }
 0x1b3   : > { %v403_v3 = vmul.f32 %v617_v2, %v401_v1 }
 0x1b5   : > { %v404_v4 = vsub.f32 2.0, %v403_v3 }
 0x1b7   : > { %v405_v5 = vmul.f32 %v617_v2, %v404_v4 }
 0x1b9   : > { %v407_v6 = vmul.f32 %v611_v56, %v405_v5  ;;  %v406_v7 = vmul.f32 %v609_v55, %v405_v5  ;;  %v408_v8 = vmul.f32 %v613_v58, %v405_v5  ;;  %v409_v9 = vmul.f32 %v615_v60, %v405_v5 }
 0x1bb   : > { %591 = vmatmul.msk.f32.vlgmr.msrb.gmra.mxu2 %vm375_vm1, %v406_v7  ;;  %592 = vmatmul.msk.f32.vlgmr.msra.gmra.mxu3 %vm375_vm1, %v407_v6 }
 0x1bc   : > { %593 = vmatmul.msk.f32.vlgmr.msra.gmra.mxu0 %vm375_vm1, %v408_v8  ;;  %594 = vmatmul.msk.f32.vlgmr.msra.gmra.mxu1 %vm375_vm1, %v409_v9 }
 0x239   : > { %v476_v10 = vpop.f32.mrf.mxu0  ;;  %v499_v11 = vpop.f32.mrf.mxu1 }
 0x23a   : > { %511 = vrot.lane.b32.xlu2 %v499_v11, %s627_s20  ;;  %507 = vrot.lane.b32.xlu1 %v476_v10, %s626_s19 }
 0x23e   : > { %v453_v12 = vpop.f32.mrf.mxu3  ;;  %v430_v13 = vpop.f32.mrf.mxu2 }
 0x23f   : > { %503 = vrot.lane.b32.xlu0 %v453_v12, %s628_s21 }
 0x294   : > { %v512_v17 = vpop.permute.xlu2 %511 }
 0x2ac   : > { %v508_v15 = vpop.permute.xlu1 %507 }
 0x2b1   : > { %v504_v14 = vpop.permute.xlu0 %503 }
 0x2b2   : > { %v514_v16 = vsel %vm187_vm0, %v430_v13, %v504_v14 }
 0x2b3   : > { %v516_v18 = vsel %vm515_vm2, %v514_v16, %v508_v15 }
 0x2b4   : > { %v518_v19 = vsel %vm517_vm3, %v516_v18, %v512_v17 }
 0x2b5   : > { %519 = vst [vmem:[%s165_s24] sm:$0xff] %v518_v19 }
 0x2b6 PF: > { %s13_s12 = sadd.s32 1, %s624_s12  }
 0x2b7   : > { %p10_p4 = scmp.ge.s32.totalorder %s13_s12, 4  }
 0x2b9   :  { %12 = sbr.rel (!%p10_p4) target bundleno = 1 (0x1), region = 62 }

</bundles_post_ra>
